<compile_context>
chip_gen: v5e
topology: v5e:2x2
jax: 0.10.0
libtpu: 0.0.40
codegen_flags: <defaults>
</compile_context>

<pallas_src>
import jax
import jax.numpy as jnp
from jax.experimental import pallas as pl
from jax.experimental.pallas import tpu as pltpu

_EPS = 0.001                       # CharbonnierLoss default eps
_LANES = 128
_SUBLANES = 8
_CHUNK_ROWS_CAP = 256              # rows per inner fori_loop iteration (<= 32 f32 vreg groups)
_TARGET_BLOCK_BYTES = 8 * 1024 * 1024    # per input per grid step
_VMEM_LIMIT_BYTES = 48 * 1024 * 1024     # 2 inputs x 2 buffers x 8 MiB + headroom


def _cdiv(a, b):
    return -(-a // b)


def _sublane_packing(dtype):
    itemsize = jnp.dtype(dtype).itemsize
    return _SUBLANES * max(1, 4 // itemsize)       # 8 for f32, 16 for bf16, 32 for int8/fp8


def _charbonnier_sum_jnp(x, y, eps2):
    d = x.astype(jnp.float32) - y.astype(jnp.float32)
    return jnp.sum(jnp.sqrt(d * d + jnp.float32(eps2)))


def _make_kernel(block_rows, chunk_rows, rows_total, eps2, needs_mask):
    n_chunks = block_rows // chunk_rows            # static, exact division
    groups = chunk_rows // _SUBLANES               # static

    def kernel(x_ref, y_ref, o_ref):
        # x_ref, y_ref: [block_rows, 128] native dtype
        # o_ref:        [8, 128] f32 partial sums, resident across the whole grid
        @pl.when(pl.program_id(0) == 0)
        def _init():
            o_ref[...] = jnp.zeros_like(o_ref)

        base_row = pl.program_id(0) * block_rows

        def chunk_body(c, acc):
            r0 = pl.multiple_of(c * chunk_rows, chunk_rows)
            xv = x_ref[pl.ds(r0, chunk_rows), :].astype(jnp.float32)
            yv = y_ref[pl.ds(r0, chunk_rows), :].astype(jnp.float32)
            d = xv - yv
            v = jnp.sqrt(d * d + jnp.float32(eps2))     # sqrt -> EUP slot; mul/add -> VALU
            if needs_mask:
                # Last grid block is partial: rows past the real row count hold
                # stale VMEM garbage; select them to 0 before accumulating.
                row = jax.lax.broadcasted_iota(jnp.int32, (chunk_rows, _LANES), 0)
                grow = base_row + c * chunk_rows + row
                v = jnp.where(grow < rows_total, v, 0.0)
            # Reduce only the leading row-group axis: result stays vreg-shaped
            # (8,128), pure VALU adds, no cross-lane XLU work in the hot loop.
            return acc + jnp.sum(v.reshape(groups, _SUBLANES, _LANES), axis=0)

        acc = jax.lax.fori_loop(
            0, n_chunks, chunk_body,
            jnp.zeros((_SUBLANES, _LANES), jnp.float32))
        o_ref[...] += acc

    return kernel


def charbonnier_loss(x, y, eps=_EPS):
    """Charbonnier loss: mean(sqrt((x - y)^2 + eps^2)). Returns an f32 scalar."""
    assert x.shape == y.shape, (x.shape, y.shape)
    n = int(x.size)
    eps2 = float(eps) * float(eps)                 # Python constant baked into kernel
    if n == 0:
        return jnp.float32(jnp.nan)                # matches torch.mean on empty input

    packing = max(_sublane_packing(x.dtype), _sublane_packing(y.dtype))
    itemsize = max(jnp.dtype(x.dtype).itemsize, jnp.dtype(y.dtype).itemsize)

    x_flat = x.reshape(-1)                         # contiguous -> free bitcast
    y_flat = y.reshape(-1)

    rows = n // _LANES                             # full 128-wide rows
    rem = n - rows * _LANES                        # < 128 trailing elements

    if rows < packing:
        # Too small for a legal (packing, 128) block — pure jnp path (tiny input).
        return _charbonnier_sum_jnp(x_flat, y_flat, eps2) / jnp.float32(n)

    if rem > 0:
        # <128-element remainder: tiny jnp epilogue (no full-array pad).
        tail = _charbonnier_sum_jnp(x_flat[rows * _LANES:], y_flat[rows * _LANES:], eps2)
        # NOTE: this slice materializes one copy of the main region per input; it only
        # happens when n % 128 != 0. The common case below is fully zero-copy.
        x_main = x_flat[: rows * _LANES]
        y_main = y_flat[: rows * _LANES]
    else:
        tail = jnp.float32(0.0)
        x_main = x_flat
        y_main = y_flat

    x2 = x_main.reshape(rows, _LANES)              # lane-dense view, no data movement
    y2 = y_main.reshape(rows, _LANES)

    # ---- tiling: big lane-dense blocks, chunked reduction, masked partial tail ----
    chunk_rows = min(_CHUNK_ROWS_CAP, (rows // packing) * packing)
    target_rows = max(chunk_rows,
                      (_TARGET_BLOCK_BYTES // (_LANES * itemsize)) // chunk_rows * chunk_rows)
    block_rows = max(chunk_rows,
                     min(target_rows, (rows // chunk_rows) * chunk_rows))
    steps = _cdiv(rows, block_rows)
    needs_mask = (steps * block_rows != rows)      # static: last block partial?

    kernel = _make_kernel(block_rows, chunk_rows, rows, eps2, needs_mask)

    partials = pl.pallas_call(
        kernel,
        out_shape=jax.ShapeDtypeStruct((_SUBLANES, _LANES), jnp.float32),
        grid_spec=pltpu.PrefetchScalarGridSpec(
            num_scalar_prefetch=0,
            grid=(steps,),
            in_specs=[
                pl.BlockSpec((block_rows, _LANES), lambda i: (i, 0)),
                pl.BlockSpec((block_rows, _LANES), lambda i: (i, 0)),
            ],
            out_specs=pl.BlockSpec((_SUBLANES, _LANES), lambda i: (0, 0)),
        ),
        compiler_params=pltpu.CompilerParams(
            dimension_semantics=("arbitrary",),
            vmem_limit_bytes=_VMEM_LIMIT_BYTES,
        ),
    )(x2, y2)

    total = jnp.sum(partials) + tail               # one-time epilogue cross-lane reduce
    return total / jnp.float32(n)


if __name__ == "__main__":
    key = jax.random.PRNGKey(0)
    kx, ky = jax.random.split(key)
    loss_fn = jax.jit(charbonnier_loss)
    eps2 = jnp.float32(_EPS * _EPS)

    # Primary check: typical (B, C, H, W) usage; element count multiple of 128
    # -> fully zero-copy path through the kernel.
    shape = (2, 4, 16, 16)
    x = jax.random.normal(kx, shape, dtype=jnp.float32)
    y = jax.random.normal(ky, shape, dtype=jnp.float32)
    loss = loss_fn(x, y)
    jax.block_until_ready(loss)
    ref = jnp.mean(jnp.sqrt((x - y) * (x - y) + eps2))
    assert loss.shape == () and bool(jnp.isfinite(loss))
    assert jnp.allclose(loss, ref, rtol=1e-5, atol=1e-6), (loss, ref)

    # Secondary check: odd element count -> multi-step grid, masked partial last
    # block and the <128-element jnp tail epilogue.
    shape2 = (2, 3, 81, 81)
    xb = jax.random.normal(kx, shape2, dtype=jnp.float32)
    yb = jax.random.normal(ky, shape2, dtype=jnp.float32)
    loss2 = loss_fn(xb, yb)
    jax.block_until_ready(loss2)
    ref2 = jnp.mean(jnp.sqrt((xb - yb) * (xb - yb) + eps2))
    assert jnp.allclose(loss2, ref2, rtol=1e-5, atol=1e-6), (loss2, ref2)

    print("KERNEL_OK")
</pallas_src>

<mosaic_0001>
module attributes {stable_mosaic.version = 11 : i64} {
  func.func @kernel(%arg0: i32, %arg1: memref<16x128xf32, #tpu.memory_space<vmem>>, %arg2: memref<16x128xf32, #tpu.memory_space<vmem>>, %arg3: memref<8x128xf32, #tpu.memory_space<vmem>>) attributes {dimension_semantics = [#tpu.dimension_semantics<arbitrary>], iteration_bounds = array<i64: 1>, scalar_prefetch = 0 : i64, scratch_operands = 0 : i64, tpu.core_type = #tpu.core_type<tc>, window_params = [{transform_indices = @transform_0, window_bounds = array<i64: 16, 128>}, {transform_indices = @transform_1, window_bounds = array<i64: 16, 128>}, {pipeline_mode = #tpu.pipeline_mode<synchronous>, transform_indices = @transform_2, window_bounds = array<i64: 8, 128>}]} {
    %c0_i32 = arith.constant 0 : i32
    %0 = arith.cmpi eq, %arg0, %c0_i32 : i32
    %1 = arith.extui %0 : i1 to i32
    %c0_i32_0 = arith.constant 0 : i32
    %2 = arith.cmpi ne, %1, %c0_i32_0 : i32
    scf.if %2 {
      %cst_9 = arith.constant 0.000000e+00 : f32
      %21 = vector.broadcast %cst_9 : f32 to vector<8x128xf32>
      %c0_10 = arith.constant 0 : index
      %c0_11 = arith.constant 0 : index
      %22 = vector.load %arg3[%c0_10, %c0_11] : memref<8x128xf32, #tpu.memory_space<vmem>>, vector<8x128xf32>
      tpu.vector_store %arg3[%c0_10, %c0_11], %21 {strides = array<i32>} : memref<8x128xf32, #tpu.memory_space<vmem>>, vector<8x128xf32>,
    } else {
    }
    %cst = arith.constant 0.000000e+00 : f32
    %3 = vector.broadcast %cst : f32 to vector<8x128xf32>
    %c0_i32_1 = arith.constant 0 : i32
    %c16_i32 = arith.constant 16 : i32
    %4 = arith.muli %c0_i32_1, %c16_i32 : i32
    %5 = tpu.assume_multiple %4, 16 : i32
    %6 = arith.index_cast %5 : i32 to index
    %c0 = arith.constant 0 : index
    %7 = vector.load %arg1[%6, %c0] : memref<16x128xf32, #tpu.memory_space<vmem>>, vector<16x128xf32>
    %8 = arith.index_cast %5 : i32 to index
    %c0_2 = arith.constant 0 : index
    %9 = vector.load %arg2[%8, %c0_2] : memref<16x128xf32, #tpu.memory_space<vmem>>, vector<16x128xf32>
    %10 = arith.subf %7, %9 : vector<16x128xf32>
    %11 = arith.mulf %10, %10 : vector<16x128xf32>
    %cst_3 = arith.constant 9.99999997E-7 : f32
    %12 = vector.broadcast %cst_3 : f32 to vector<16x128xf32>
    %13 = arith.addf %11, %12 : vector<16x128xf32>
    %14 = math.sqrt %13 : vector<16x128xf32>
    %15 = vector.shape_cast %14 : vector<16x128xf32> to vector<2x8x128xf32>
    %cst_4 = arith.constant dense<0.000000e+00> : vector<8x128xf32>
    %16 = vector.multi_reduction <add>, %15, %cst_4 [0] : vector<2x8x128xf32> to vector<8x128xf32>
    %17 = arith.addf %3, %16 : vector<8x128xf32>
    %c1_i32 = arith.constant 1 : i32
    %c0_5 = arith.constant 0 : index
    %c0_6 = arith.constant 0 : index
    %18 = vector.load %arg3[%c0_5, %c0_6] : memref<8x128xf32, #tpu.memory_space<vmem>>, vector<8x128xf32>
    %19 = arith.addf %18, %17 : vector<8x128xf32>
    %c0_7 = arith.constant 0 : index
    %c0_8 = arith.constant 0 : index
    %20 = vector.load %arg3[%c0_7, %c0_8] : memref<8x128xf32, #tpu.memory_space<vmem>>, vector<8x128xf32>
    tpu.vector_store %arg3[%c0_7, %c0_8], %19 {strides = array<i32>} : memref<8x128xf32, #tpu.memory_space<vmem>>, vector<8x128xf32>,
    return
  }
  func.func @transform_0(%arg0: i32) -> (i32, i32) {
    %c0_i32 = arith.constant 0 : i32
    %c0_i32_0 = arith.constant 0 : i32
    return %arg0, %c0_i32 : i32, i32
  }
  func.func @transform_1(%arg0: i32) -> (i32, i32) {
    %c0_i32 = arith.constant 0 : i32
    %c0_i32_0 = arith.constant 0 : i32
    return %arg0, %c0_i32 : i32, i32
  }
  func.func @transform_2(%arg0: i32) -> (i32, i32) {
    %c0_i32 = arith.constant 0 : i32
    %c0_i32_0 = arith.constant 0 : i32
    %c0_i32_1 = arith.constant 0 : i32
    return %c0_i32, %c0_i32_0 : i32, i32
  }
}

</mosaic_0001>

<bundles_post_ra>
// kernel: charbonnier_loss.1
= control target key start
LH: loop header
LB: loop body
LE: loop exit
PB: predicated region body
PF: predicated region fallthrough
CT: control target
= control target key end

     0   :  { %s94_s0 = inlined_call_operand.vmem [shape: f32[16,128], index: 0, kind: input, shape index: {}]   ;;  %s95_s1 = inlined_call_operand.vmem [shape: f32[16,128], index: 1, kind: input, shape index: {}]   ;;  %s96_s2 = inlined_call_operand.vmem [shape: f32[8,128], index: 2, kind: output, shape index: {}]  }
   0x1   :  { %v16_v0 = vld [vmem:[%s94_s0] sm:$0xff]  ;;  %v17_v1 = vld [vmem:[%s94_s0 + $0x8] sm:$0xff] }
   0x2   :  { %v18_v2 = vld [vmem:[%s95_s1] sm:$0xff]  ;;  %v19_v3 = vld [vmem:[%s95_s1 + $0x8] sm:$0xff] }
   0x3   :  { %v20_v4 = vsub.f32 %v16_v0, %v18_v2  ;;  %v21_v5 = vsub.f32 %v17_v1, %v19_v3 }
   0x5   :  { %v22_v6 = vmul.f32 %v20_v4, %v20_v4  ;;  %v23_v7 = vmul.f32 %v21_v5, %v21_v5 }
   0x7   :  { %v24_v8 = vadd.f32 1e-06, %v22_v6  ;;  %v25_v9 = vadd.f32 1e-06, %v23_v7 }
   0x9   :  { %60 = vrsqrt.f32 %v24_v8  ;;  %vm33_vm0 = vcmp.eq.f32.partialorder %v24_v8, inf  ;;  %v36_v21 = vand.u32 2147483648, %v24_v8  ;;  %vm35_vm1 = vcmp.eq.f32.partialorder %v24_v8, 0.0 }
   0xa   :  { %62 = vrsqrt.f32 %v25_v9  ;;  %vm45_vm2 = vcmp.eq.f32.partialorder %v25_v9, inf  ;;  %v48_v24 = vand.u32 2147483648, %v25_v9  ;;  %vm47_vm3 = vcmp.eq.f32.partialorder %v25_v9, 0.0 }
   0xf   :  { %v61_v10 = vpop.eup %60 }
  0x10   :  { %v63_v11 = vpop.eup %62  ;;  %v27_v12 = vmul.f32 %v61_v10, %v24_v8 }
  0x11   :  { %v39_v13 = vmul.f32 %v63_v11, %v25_v9 }
  0x12   :  { %v28_v14 = vmul.f32 %v61_v10, %v27_v12 }
  0x13   :  { %v40_v15 = vmul.f32 %v63_v11, %v39_v13 }
  0x14   :  { %v29_v16 = vmul.f32 0.5, %v28_v14 }
  0x15   :  { %v41_v17 = vmul.f32 0.5, %v40_v15 }
  0x16   :  { %v30_v18 = vsub.f32 1.5, %v29_v16 }
  0x17   :  { %v42_v19 = vsub.f32 1.5, %v41_v17 }
  0x18   :  { %v31_v20 = vmul.f32 %v61_v10, %v30_v18 }
  0x19   :  { %v43_v22 = vmul.f32 %v63_v11, %v42_v19 }
  0x1a   :  { %v32_v23 = vmul.f32 %v31_v20, %v24_v8 }
  0x1b   :  { %v44_v25 = vmul.f32 %v43_v22, %v25_v9 }
  0x1c   :  { %v34_v26 = vsel %vm33_vm0, %v24_v8, %v32_v23 }
  0x1d   :  { %v37_v27 = vsel %vm35_vm1, %v36_v21, %v34_v26  ;;  %v46_v28 = vsel %vm45_vm2, %v25_v9, %v44_v25 }
  0x1e   :  { %v49_v29 = vsel %vm47_vm3, %v48_v24, %v46_v28 }
  0x1f   :  { %v50_v30 = vadd.f32 %v49_v29, %v37_v27 }
  0x21   :  { %54 = vst [vmem:[%s96_s2] sm:$0xff] %v50_v30 }

</bundles_post_ra>
